<compile_context>
chip_gen: v7x
topology: tpu7x:2x2x1
jax: 0.10.0
libtpu: 0.0.40
codegen_flags: <defaults>
</compile_context>

<pallas_src>
import math

import jax
import jax.numpy as jnp
from jax import lax
from jax.experimental import pallas as pl
from jax.experimental.pallas import tpu as pltpu


def _round_up(x, m):
    return ((x + m - 1) // m) * m


# ---------------------------------------------------------------------------
# Left lane-rotation helper.  pltpu.roll is expected to follow jnp.roll
# semantics (elements move to higher indices for positive shift); a one-time
# hardware probe (cached) confirms the direction and falls back to a
# slice+concat rotation if pltpu.roll is unavailable or behaves unexpectedly.
# ---------------------------------------------------------------------------
_ROLL_MODE = None


def _get_roll_mode():
    global _ROLL_MODE
    if _ROLL_MODE is None:
        try:
            def probe(x_ref, o_ref):
                o_ref[...] = pltpu.roll(x_ref[...], 131, axis=1)

            with jax.ensure_compile_time_eval():
                x = jnp.tile(jnp.arange(256, dtype=jnp.float32)[None, :], (8, 1))
                y = pl.pallas_call(
                    probe,
                    out_shape=jax.ShapeDtypeStruct((8, 256), jnp.float32))(x)
                if bool(jnp.array_equal(y, jnp.roll(x, 131, axis=1))):
                    _ROLL_MODE = "roll"        # pltpu.roll == jnp.roll direction
                elif bool(jnp.array_equal(y, jnp.roll(x, -131, axis=1))):
                    _ROLL_MODE = "roll_flip"   # opposite direction
                else:
                    _ROLL_MODE = "concat"
        except Exception:                       # conservative fallback
            _ROLL_MODE = "concat"
    return _ROLL_MODE


def _shift_left(x, n, mode):
    """out[:, j] = x[:, (j + n) % W] -- left rotation along the lane axis."""
    w = x.shape[-1]
    n = n % w
    if n == 0:
        return x
    if mode == "roll":
        return pltpu.roll(x, w - n, axis=x.ndim - 1)
    if mode == "roll_flip":
        return pltpu.roll(x, n, axis=x.ndim - 1)
    return jnp.concatenate([x[:, n:], x[:, :n]], axis=-1)


# ---------------------------------------------------------------------------
# One TCN block applied to an in-VMEM f32 window `x` of shape (Cin, W).
# The window width W (a multiple of 128) is preserved; the number of valid
# leading lanes shrinks by (k-1)*d.
# ---------------------------------------------------------------------------
def _apply_block(x, w_ref, bias, alpha, cfg, operand_dtype, roll_mode):
    k, d, cin, cout = cfg["k"], cfg["d"], cfg["cin"], cfg["cout"]
    assert x.shape[0] == cin
    wl = x.shape[-1]

    if cin == 1:
        # First block: contraction K*1 is far too small for the MXU -> K VPU
        # broadcast-FMAs on the full-width window (taps come from XLU rolls).
        w = w_ref[...].astype(jnp.float32)            # (cout, k+1) = [taps | res]
        acc = jnp.zeros((cout, wl), jnp.float32)
        tap = x
        for i in range(k):
            tap = _shift_left(x, i * d, roll_mode)
            acc = acc + w[:, i:i + 1] * tap
        res = w[:, k:k + 1] * tap                      # residual reuses the last tap
    else:
        # im2col via full-width rolls (no unaligned slices), then ONE MXU
        # matmul: rows [:cout] = dilated conv, rows [cout:] = 1x1 residual.
        xcol = jnp.concatenate(
            [_shift_left(x, i * d, roll_mode).astype(operand_dtype)
             for i in range(k)],
            axis=0)                                    # (k*cin, W)
        y = jnp.dot(w_ref[...], xcol, preferred_element_type=jnp.float32)
        acc, res = y[:cout, :], y[cout:, :]

    acc = acc + bias                                   # (cout, 1) f32 bias
    acc = jnp.where(acc > 0, acc, alpha * acc)         # PReLU (shared alpha)
    return acc + res                                   # f32 activations in-kernel


def _make_fused_kernel(cfgs, tl, operand_dtype, roll_mode):
    nb = len(cfgs)

    def kernel(alphas_ref, xa_ref, xb_ref, bias_ref, *rest):
        o_ref = rest[nb]                               # rest = (w_0..w_{nb-1}, o)
        # Stitch the main tile and its 128-aligned halo into one full-width
        # window; all intermediates keep this lane-dense width.
        cur = jnp.concatenate([xa_ref[0], xb_ref[0]], axis=-1).astype(jnp.float32)
        for n, cfg in enumerate(cfgs):
            cout = cfg["cout"]
            bias = bias_ref[0:cout, n:n + 1]           # (cout, 1) f32
            cur = _apply_block(cur, rest[n], bias, alphas_ref[n], cfg,
                               operand_dtype, roll_mode)
        # First tl lanes are exactly the valid outputs of this tile; Pallas
        # masks the last partial output block at the array edge.
        o_ref[0] = cur[:, :tl].astype(o_ref.dtype)

    return kernel


# ---------------------------------------------------------------------------
# Fused TCN forward: one pallas_call for the whole block stack.
# ---------------------------------------------------------------------------
def tcn_forward(x, params, *, l_tile=8192, mxu_bf16=False,
                vmem_limit_bytes=48 * 1024 * 1024):
    """x: (B, Cin0, L) -> (B, Cout_last, L - sum_n (K-1)*dilation_n)."""
    B, c0, L = x.shape
    io_dtype = x.dtype
    operand_dtype = (jnp.bfloat16 if (mxu_bf16 or io_dtype == jnp.bfloat16)
                     else jnp.float32)

    # ---- fold weights on the host into the layouts the kernel expects ------
    cfgs, wlist, alphas, biases = [], [], [], []
    for p in params:
        w = jnp.asarray(p["w"], jnp.float32)           # (cout, cin, k)
        cout, cin, k = w.shape
        d = int(p["dilation"])
        wres = jnp.asarray(p["wres"], jnp.float32).reshape(cout, cin)
        if cin == 1:
            # (cout, k+1): K conv taps then the 1x1 residual weight.
            wf = jnp.concatenate([w[:, 0, :], wres], axis=1)
        else:
            # Row-stack [W_conv ; W_res zero-padded onto the last tap's cin
            # columns] -> one matmul yields conv + residual together.
            wmain = jnp.transpose(w, (0, 2, 1)).reshape(cout, k * cin)
            wres_pad = jnp.zeros((cout, k * cin), jnp.float32)
            wres_pad = wres_pad.at[:, (k - 1) * cin:].set(wres)
            wf = jnp.concatenate([wmain, wres_pad], axis=0)   # (2*cout, k*cin)
        wlist.append(wf.astype(operand_dtype))
        biases.append(jnp.asarray(p["b"], jnp.float32).reshape(cout))
        alphas.append(jnp.asarray(p["alpha"], jnp.float32).reshape(()))
        cfgs.append(dict(k=k, d=d, cin=cin, cout=cout))

    nb = len(cfgs)
    alphas = jnp.stack(alphas)                          # (nb,) f32 -> SMEM
    cout_max = max(c["cout"] for c in cfgs)
    bias_all = jnp.zeros((cout_max, nb), jnp.float32)   # one array for all biases
    for n, b in enumerate(biases):
        bias_all = bias_all.at[:b.shape[0], n].set(b)

    s_total = sum((c["k"] - 1) * c["d"] for c in cfgs)  # receptive field - 1
    l_out = L - s_total
    if l_out <= 0:
        raise ValueError("input shorter than the receptive field")
    cout_last = cfgs[-1]["cout"]

    # ---- lane-aligned tiling of the length axis (main tile + halo) ---------
    th = _round_up(max(s_total, 1), 128)                # halo, multiple of 128
    tl = _round_up(min(max(l_tile, 128), max(l_out, 1)), th)
    assert th >= s_total and tl % th == 0               # halo invariant
    num_tiles = pl.cdiv(l_out, tl)
    # v7x megacore: best effort to keep B * num_tiles even so both TensorCores
    # get equal shares of the (fully parallel) grid.
    if (B * num_tiles) % 2 == 1 and num_tiles > 1:
        t = tl
        while t > th and (B * pl.cdiv(l_out, t)) % 2 == 1:
            t -= th
        if (B * pl.cdiv(l_out, t)) % 2 == 0:
            tl = t
            num_tiles = pl.cdiv(l_out, tl)
    ratio = tl // th

    # Rough per-step VMEM working-set check (fail with a clear message instead
    # of a cryptic Mosaic OOM for over-large receptive fields / tiles).
    win_bytes = 4 * (tl + th) * max(
        c["k"] * c["cin"] + 3 * c["cout"] + c["cin"] for c in cfgs)
    if win_bytes > vmem_limit_bytes:
        raise ValueError(
            f"tile working set ~{win_bytes >> 20} MiB exceeds the VMEM budget; "
            "reduce l_tile or split the block stack into multiple kernels")

    # Pad so main + halo input blocks are always fully in-bounds.  The output
    # is written at its exact final size (Pallas masks the last partial tile).
    l_pad = num_tiles * tl + th
    if l_pad > L:
        x = jnp.pad(x, ((0, 0), (0, 0), (0, l_pad - L)))

    kernel = _make_fused_kernel(cfgs, tl, operand_dtype, _get_roll_mode())

    in_specs = [
        # PReLU alphas: scalars on the SMEM scalar path.
        pl.BlockSpec(memory_space=pltpu.MemorySpace.SMEM),
        # Main input tile and its 128-aligned halo tile (same array twice).
        pl.BlockSpec((1, c0, tl), lambda bi, ti: (bi, 0, ti)),
        pl.BlockSpec((1, c0, th), lambda bi, ti: (bi, 0, (ti + 1) * ratio)),
        # All conv biases, one small f32 array.
        pl.BlockSpec(bias_all.shape, lambda bi, ti: (0, 0)),
    ]
    for wf in wlist:                                    # one fused weight per block
        in_specs.append(pl.BlockSpec(wf.shape, lambda bi, ti: (0, 0)))

    out = pl.pallas_call(
        kernel,
        out_shape=jax.ShapeDtypeStruct((B, cout_last, l_out), io_dtype),
        grid_spec=pltpu.PrefetchScalarGridSpec(
            num_scalar_prefetch=0,
            grid=(B, num_tiles),
            in_specs=in_specs,
            out_specs=pl.BlockSpec((1, cout_last, tl),
                                   lambda bi, ti: (bi, 0, ti)),
        ),
        compiler_params=pltpu.CompilerParams(
            dimension_semantics=("parallel", "parallel"),
            vmem_limit_bytes=vmem_limit_bytes),
    )(alphas, x, x, bias_all, *wlist)
    return out


# ---------------------------------------------------------------------------
# Parameter construction (mirrors TCN.__init__'s shapes).  Biases/alphas are
# randomised (instead of zeros_/0.25 init) purely so the correctness check
# exercises those terms; forward semantics are identical to the module.
# ---------------------------------------------------------------------------
def _xavier_uniform(key, shape):
    fan_in = shape[1] * shape[2]
    fan_out = shape[0] * shape[2]
    bound = math.sqrt(6.0 / (fan_in + fan_out))
    return jax.random.uniform(key, shape, jnp.float32, -bound, bound)


def make_tcn_params(key, n_inputs, n_outputs, n_blocks, kernel_size,
                    n_channels, dilation_growth):
    params = []
    for n in range(n_blocks):
        if n == 0:
            in_ch, out_ch = n_inputs, n_channels
        elif n + 1 == n_blocks:
            in_ch, out_ch = n_channels, n_outputs
        else:
            in_ch, out_ch = n_channels, n_channels
        dilation = dilation_growth ** n
        key, k1, k2, k3 = jax.random.split(key, 4)
        params.append(dict(
            w=_xavier_uniform(k1, (out_ch, in_ch, kernel_size)),
            b=0.1 * jax.random.normal(k3, (out_ch,), jnp.float32),
            alpha=jnp.float32(0.05 + 0.25 * n),         # distinct per block
            wres=_xavier_uniform(k2, (out_ch, in_ch, 1)),
            kernel_size=kernel_size,
            dilation=dilation,
        ))
    return params


# ---------------------------------------------------------------------------
# Pure-JAX reference (lax conv, highest precision) for the correctness check.
# ---------------------------------------------------------------------------
def tcn_reference(x, params):
    x = x.astype(jnp.float32)
    for p in params:
        k, d = int(p["kernel_size"]), int(p["dilation"])
        y = lax.conv_general_dilated(
            x, p["w"], window_strides=(1,), padding="VALID",
            rhs_dilation=(d,), dimension_numbers=("NCH", "OIH", "NCH"),
            precision=lax.Precision.HIGHEST)
        y = y + p["b"][None, :, None]
        y = jnp.where(y > 0, y, p["alpha"] * y)
        r = lax.conv_general_dilated(
            x, p["wres"], window_strides=(1,), padding="VALID",
            dimension_numbers=("NCH", "OIH", "NCH"),
            precision=lax.Precision.HIGHEST)
        x = y + r[..., (k - 1) * d:]
    return x


if __name__ == "__main__":
    # Small-but-representative config: exercises the cin=1 first block, a
    # middle block and a cout=1 last block, plus multi-tile + halo + masked
    # edge-store paths.  (Module defaults have a ~4.2M-sample receptive field
    # -- see TODO at the top -- so a reduced config is used here.)
    n_inputs, n_outputs = 1, 1
    n_blocks, kernel_size, n_channels, dilation_growth = 3, 3, 16, 2

    key = jax.random.PRNGKey(0)
    key, kx = jax.random.split(key)
    B, L = 2, 400
    x = jax.random.normal(kx, (B, n_inputs, L), jnp.float32)    # (B, C, L)

    params = make_tcn_params(key, n_inputs, n_outputs, n_blocks,
                             kernel_size, n_channels, dilation_growth)
    ref = jax.block_until_ready(tcn_reference(x, params))

    # 1) f32 I/O + f32 MXU operands; l_tile=128 to exercise multi-tile + halo.
    #    (tolerance covers either f32-matmul emulation path on the MXU)
    out = jax.block_until_ready(tcn_forward(x, params, l_tile=128))
    assert out.shape == ref.shape, (out.shape, ref.shape)
    err = float(jnp.max(jnp.abs(out - ref)))
    assert err < 2e-2, err

    # 2) Default tile (single tile here) with bf16 MXU operands, f32 I/O.
    out2 = jax.block_until_ready(tcn_forward(x, params, mxu_bf16=True))
    err2 = float(jnp.max(jnp.abs(out2 - ref)))
    assert err2 < 0.25, err2

    # 3) bf16 I/O (halves HBM traffic); f32 in-kernel accumulation.
    out3 = jax.block_until_ready(
        tcn_forward(x.astype(jnp.bfloat16), params, l_tile=128))
    err3 = float(jnp.max(jnp.abs(out3.astype(jnp.float32) - ref)))
    assert err3 < 0.25, err3

    print("KERNEL_OK")
</pallas_src>

<mosaic_0001>
module attributes {stable_mosaic.version = 11 : i64} {
  func.func @probe(%arg0: memref<8x256xf32, #tpu.memory_space<vmem>>, %arg1: memref<8x256xf32, #tpu.memory_space<vmem>>) attributes {dimension_semantics = [], scalar_prefetch = 0 : i64, scratch_operands = 0 : i64, tpu.core_type = #tpu.core_type<tc>} {
    %c0 = arith.constant 0 : index
    %c0_0 = arith.constant 0 : index
    %0 = vector.load %arg0[%c0, %c0_0] : memref<8x256xf32, #tpu.memory_space<vmem>>, vector<8x256xf32>
    %c131_i32 = arith.constant 131 : i32
    %1 = tpu.dynamic_rotate %0 by %c131_i32 dim 1 : vector<8x256xf32>, i32 -> vector<8x256xf32>
    %c0_1 = arith.constant 0 : index
    %c0_2 = arith.constant 0 : index
    %2 = vector.load %arg1[%c0_1, %c0_2] : memref<8x256xf32, #tpu.memory_space<vmem>>, vector<8x256xf32>
    tpu.vector_store %arg1[%c0_1, %c0_2], %1 {strides = array<i32>} : memref<8x256xf32, #tpu.memory_space<vmem>>, vector<8x256xf32>,
    return
  }
}

module attributes {stable_mosaic.version = 11 : i64} {
  func.func @kernel(%arg0: i32, %arg1: i32, %arg2: memref<3xf32, #tpu.memory_space<smem>>, %arg3: memref<1x1x128xf32, #tpu.memory_space<vmem>>, %arg4: memref<1x1x128xf32, #tpu.memory_space<vmem>>, %arg5: memref<16x3xf32, #tpu.memory_space<vmem>>, %arg6: memref<16x4xf32, #tpu.memory_space<vmem>>, %arg7: memref<32x48xf32, #tpu.memory_space<vmem>>, %arg8: memref<2x48xf32, #tpu.memory_space<vmem>>, %arg9: memref<1x1x128xf32, #tpu.memory_space<vmem>>) attributes {dimension_semantics = [#tpu.dimension_semantics<parallel>, #tpu.dimension_semantics<parallel>], iteration_bounds = array<i64: 2, 4>, scalar_prefetch = 0 : i64, scratch_operands = 0 : i64, tpu.core_type = #tpu.core_type<tc>, window_params = [{transform_indices = @transform_0, window_bounds = array<i64: 3>}, {transform_indices = @transform_1, window_bounds = array<i64: 1, 1, 128>}, {transform_indices = @transform_2, window_bounds = array<i64: 1, 1, 128>}, {pipeline_mode = #tpu.pipeline_mode<synchronous>, transform_indices = @transform_3, window_bounds = array<i64: 16, 3>}, {pipeline_mode = #tpu.pipeline_mode<synchronous>, transform_indices = @transform_4, window_bounds = array<i64: 16, 4>}, {pipeline_mode = #tpu.pipeline_mode<synchronous>, transform_indices = @transform_5, window_bounds = array<i64: 32, 48>}, {pipeline_mode = #tpu.pipeline_mode<synchronous>, transform_indices = @transform_6, window_bounds = array<i64: 2, 48>}, {transform_indices = @transform_7, window_bounds = array<i64: 1, 1, 128>}]} {
    %c0 = arith.constant 0 : index
    %c0_0 = arith.constant 0 : index
    %c0_1 = arith.constant 0 : index
    %0 = vector.load %arg3[%c0, %c0_0, %c0_1] : memref<1x1x128xf32, #tpu.memory_space<vmem>>, vector<1x1x128xf32>
    %1 = vector.shape_cast %0 : vector<1x1x128xf32> to vector<1x128xf32>
    %c0_2 = arith.constant 0 : index
    %c0_3 = arith.constant 0 : index
    %c0_4 = arith.constant 0 : index
    %2 = vector.load %arg4[%c0_2, %c0_3, %c0_4] : memref<1x1x128xf32, #tpu.memory_space<vmem>>, vector<1x1x128xf32>
    %3 = vector.shape_cast %2 : vector<1x1x128xf32> to vector<1x128xf32>
    %4 = tpu.concatenate %1, %3 in 1 : vector<1x128xf32>, vector<1x128xf32> -> vector<1x256xf32>
    %c0_5 = arith.constant 0 : index
    %c0_6 = arith.constant 0 : index
    %5 = vector.load %arg5[%c0_5, %c0_6] : memref<16x3xf32, #tpu.memory_space<vmem>>, vector<16x1xf32>
    %c0_7 = arith.constant 0 : index
    %6 = memref.load %arg2[%c0_7] : memref<3xf32, #tpu.memory_space<smem>>
    %c0_8 = arith.constant 0 : index
    %c0_9 = arith.constant 0 : index
    %7 = vector.load %arg6[%c0_8, %c0_9] : memref<16x4xf32, #tpu.memory_space<vmem>>, vector<16x4xf32>
    %cst = arith.constant 0.000000e+00 : f32
    %8 = vector.broadcast %cst : f32 to vector<16x256xf32>
    %9 = vector.extract_strided_slice %7 {offsets = [0, 0], sizes = [16, 1], strides = [1, 1]} : vector<16x4xf32> to vector<16x1xf32>
    %10 = vector.broadcast %9 : vector<16x1xf32> to vector<16x256xf32>
    %11 = vector.broadcast %4 : vector<1x256xf32> to vector<16x256xf32>
    %12 = arith.mulf %10, %11 : vector<16x256xf32>
    %13 = arith.addf %8, %12 : vector<16x256xf32>
    %14 = vector.extract_strided_slice %4 {offsets = [0, 1], sizes = [1, 255], strides = [1, 1]} : vector<1x256xf32> to vector<1x255xf32>
    %15 = vector.extract_strided_slice %4 {offsets = [0, 0], sizes = [1, 1], strides = [1, 1]} : vector<1x256xf32> to vector<1x1xf32>
    %16 = tpu.concatenate %14, %15 in 1 : vector<1x255xf32>, vector<1x1xf32> -> vector<1x256xf32>
    %17 = vector.extract_strided_slice %7 {offsets = [0, 1], sizes = [16, 1], strides = [1, 1]} : vector<16x4xf32> to vector<16x1xf32>
    %18 = vector.broadcast %17 : vector<16x1xf32> to vector<16x256xf32>
    %19 = vector.broadcast %16 : vector<1x256xf32> to vector<16x256xf32>
    %20 = arith.mulf %18, %19 : vector<16x256xf32>
    %21 = arith.addf %13, %20 : vector<16x256xf32>
    %22 = vector.extract_strided_slice %4 {offsets = [0, 2], sizes = [1, 254], strides = [1, 1]} : vector<1x256xf32> to vector<1x254xf32>
    %23 = vector.extract_strided_slice %4 {offsets = [0, 0], sizes = [1, 2], strides = [1, 1]} : vector<1x256xf32> to vector<1x2xf32>
    %24 = tpu.concatenate %22, %23 in 1 : vector<1x254xf32>, vector<1x2xf32> -> vector<1x256xf32>
    %25 = vector.extract_strided_slice %7 {offsets = [0, 2], sizes = [16, 1], strides = [1, 1]} : vector<16x4xf32> to vector<16x1xf32>
    %26 = vector.broadcast %25 : vector<16x1xf32> to vector<16x256xf32>
    %27 = vector.broadcast %24 : vector<1x256xf32> to vector<16x256xf32>
    %28 = arith.mulf %26, %27 : vector<16x256xf32>
    %29 = arith.addf %21, %28 : vector<16x256xf32>
    %30 = vector.extract_strided_slice %7 {offsets = [0, 3], sizes = [16, 1], strides = [1, 1]} : vector<16x4xf32> to vector<16x1xf32>
    %31 = vector.broadcast %30 : vector<16x1xf32> to vector<16x256xf32>
    %32 = vector.broadcast %24 : vector<1x256xf32> to vector<16x256xf32>
    %33 = arith.mulf %31, %32 : vector<16x256xf32>
    %34 = vector.broadcast %5 : vector<16x1xf32> to vector<16x256xf32>
    %35 = arith.addf %29, %34 : vector<16x256xf32>
    %cst_10 = arith.constant 0.000000e+00 : f32
    %36 = vector.broadcast %cst_10 : f32 to vector<16x256xf32>
    %37 = arith.cmpf ogt, %35, %36 : vector<16x256xf32>
    %38 = vector.broadcast %6 : f32 to vector<16x256xf32>
    %39 = arith.mulf %38, %35 : vector<16x256xf32>
    %40 = arith.select %37, %35, %39 : vector<16x256xi1>, vector<16x256xf32>
    %41 = arith.addf %40, %33 : vector<16x256xf32>
    %c0_11 = arith.constant 0 : index
    %c1 = arith.constant 1 : index
    %42 = vector.load %arg5[%c0_11, %c1] : memref<16x3xf32, #tpu.memory_space<vmem>>, vector<16x1xf32>
    %c1_12 = arith.constant 1 : index
    %43 = memref.load %arg2[%c1_12] : memref<3xf32, #tpu.memory_space<smem>>
    %44 = vector.extract_strided_slice %41 {offsets = [0, 2], sizes = [16, 254], strides = [1, 1]} : vector<16x256xf32> to vector<16x254xf32>
    %45 = vector.extract_strided_slice %41 {offsets = [0, 0], sizes = [16, 2], strides = [1, 1]} : vector<16x256xf32> to vector<16x2xf32>
    %46 = tpu.concatenate %44, %45 in 1 : vector<16x254xf32>, vector<16x2xf32> -> vector<16x256xf32>
    %47 = vector.extract_strided_slice %41 {offsets = [0, 4], sizes = [16, 252], strides = [1, 1]} : vector<16x256xf32> to vector<16x252xf32>
    %48 = vector.extract_strided_slice %41 {offsets = [0, 0], sizes = [16, 4], strides = [1, 1]} : vector<16x256xf32> to vector<16x4xf32>
    %49 = tpu.concatenate %47, %48 in 1 : vector<16x252xf32>, vector<16x4xf32> -> vector<16x256xf32>
    %50 = tpu.concatenate %41, %46, %49 in 0 : vector<16x256xf32>, vector<16x256xf32>, vector<16x256xf32> -> vector<48x256xf32>
    %c0_13 = arith.constant 0 : index
    %c0_14 = arith.constant 0 : index
    %51 = vector.load %arg7[%c0_13, %c0_14] : memref<32x48xf32, #tpu.memory_space<vmem>>, vector<32x48xf32>
    %cst_15 = arith.constant dense<0.000000e+00> : vector<32x256xf32>
    %52 = tpu.matmul %51, %50, %cst_15 {dimension_numbers = #tpu.dot_dimension_numbers<[1], [0], [0], [1], [0, 0, 1, 1], [], []>} : vector<32x48xf32>, vector<48x256xf32>, vector<32x256xf32> -> vector<32x256xf32>
    %53 = vector.extract_strided_slice %52 {offsets = [0, 0], sizes = [16, 256], strides = [1, 1]} : vector<32x256xf32> to vector<16x256xf32>
    %54 = vector.extract_strided_slice %52 {offsets = [16, 0], sizes = [16, 256], strides = [1, 1]} : vector<32x256xf32> to vector<16x256xf32>
    %55 = vector.broadcast %42 : vector<16x1xf32> to vector<16x256xf32>
    %56 = arith.addf %53, %55 : vector<16x256xf32>
    %cst_16 = arith.constant 0.000000e+00 : f32
    %57 = vector.broadcast %cst_16 : f32 to vector<16x256xf32>
    %58 = arith.cmpf ogt, %56, %57 : vector<16x256xf32>
    %59 = vector.broadcast %43 : f32 to vector<16x256xf32>
    %60 = arith.mulf %59, %56 : vector<16x256xf32>
    %61 = arith.select %58, %56, %60 : vector<16x256xi1>, vector<16x256xf32>
    %62 = arith.addf %61, %54 : vector<16x256xf32>
    %c0_17 = arith.constant 0 : index
    %c2 = arith.constant 2 : index
    %63 = vector.load %arg5[%c0_17, %c2] : memref<16x3xf32, #tpu.memory_space<vmem>>, vector<1x1xf32>
    %c2_18 = arith.constant 2 : index
    %64 = memref.load %arg2[%c2_18] : memref<3xf32, #tpu.memory_space<smem>>
    %65 = vector.extract_strided_slice %62 {offsets = [0, 4], sizes = [16, 252], strides = [1, 1]} : vector<16x256xf32> to vector<16x252xf32>
    %66 = vector.extract_strided_slice %62 {offsets = [0, 0], sizes = [16, 4], strides = [1, 1]} : vector<16x256xf32> to vector<16x4xf32>
    %67 = tpu.concatenate %65, %66 in 1 : vector<16x252xf32>, vector<16x4xf32> -> vector<16x256xf32>
    %68 = vector.extract_strided_slice %62 {offsets = [0, 8], sizes = [16, 248], strides = [1, 1]} : vector<16x256xf32> to vector<16x248xf32>
    %69 = vector.extract_strided_slice %62 {offsets = [0, 0], sizes = [16, 8], strides = [1, 1]} : vector<16x256xf32> to vector<16x8xf32>
    %70 = tpu.concatenate %68, %69 in 1 : vector<16x248xf32>, vector<16x8xf32> -> vector<16x256xf32>
    %71 = tpu.concatenate %62, %67, %70 in 0 : vector<16x256xf32>, vector<16x256xf32>, vector<16x256xf32> -> vector<48x256xf32>
    %c0_19 = arith.constant 0 : index
    %c0_20 = arith.constant 0 : index
    %72 = vector.load %arg8[%c0_19, %c0_20] : memref<2x48xf32, #tpu.memory_space<vmem>>, vector<2x48xf32>
    %cst_21 = arith.constant dense<0.000000e+00> : vector<2x256xf32>
    %73 = tpu.matmul %72, %71, %cst_21 {dimension_numbers = #tpu.dot_dimension_numbers<[1], [0], [0], [1], [0, 0, 1, 1], [], []>} : vector<2x48xf32>, vector<48x256xf32>, vector<2x256xf32> -> vector<2x256xf32>
    %74 = vector.extract_strided_slice %73 {offsets = [0, 0], sizes = [1, 256], strides = [1, 1]} : vector<2x256xf32> to vector<1x256xf32>
    %75 = vector.extract_strided_slice %73 {offsets = [1, 0], sizes = [1, 256], strides = [1, 1]} : vector<2x256xf32> to vector<1x256xf32>
    %76 = vector.broadcast %63 : vector<1x1xf32> to vector<1x256xf32>
    %77 = arith.addf %74, %76 : vector<1x256xf32>
    %cst_22 = arith.constant 0.000000e+00 : f32
    %78 = vector.broadcast %cst_22 : f32 to vector<1x256xf32>
    %79 = arith.cmpf ogt, %77, %78 : vector<1x256xf32>
    %80 = vector.broadcast %64 : f32 to vector<1x256xf32>
    %81 = arith.mulf %80, %77 : vector<1x256xf32>
    %82 = arith.select %79, %77, %81 : vector<1x256xi1>, vector<1x256xf32>
    %83 = arith.addf %82, %75 : vector<1x256xf32>
    %84 = vector.extract_strided_slice %83 {offsets = [0, 0], sizes = [1, 128], strides = [1, 1]} : vector<1x256xf32> to vector<1x128xf32>
    %c0_23 = arith.constant 0 : index
    %c0_24 = arith.constant 0 : index
    %c0_25 = arith.constant 0 : index
    %85 = vector.load %arg9[%c0_23, %c0_24, %c0_25] : memref<1x1x128xf32, #tpu.memory_space<vmem>>, vector<1x1x128xf32>
    %86 = vector.shape_cast %85 : vector<1x1x128xf32> to vector<1x128xf32>
    %87 = vector.shape_cast %84 : vector<1x128xf32> to vector<1x1x128xf32>
    tpu.vector_store %arg9[%c0_23, %c0_24, %c0_25], %87 {strides = array<i32>} : memref<1x1x128xf32, #tpu.memory_space<vmem>>, vector<1x1x128xf32>,
    return
  }
  func.func @transform_0(%arg0: i32, %arg1: i32) -> i32 {
    %c0_i32 = arith.constant 0 : i32
    %c0_i32_0 = arith.constant 0 : i32
    return %c0_i32 : i32
  }
  func.func @transform_1(%arg0: i32, %arg1: i32) -> (i32, i32, i32) {
    %c0_i32 = arith.constant 0 : i32
    %c0_i32_0 = arith.constant 0 : i32
    return %arg0, %c0_i32, %arg1 : i32, i32, i32
  }
  func.func @transform_2(%arg0: i32, %arg1: i32) -> (i32, i32, i32) {
    %c1_i32 = arith.constant 1 : i32
    %0 = arith.addi %arg1, %c1_i32 : i32
    %c1_i32_0 = arith.constant 1 : i32
    %1 = arith.muli %0, %c1_i32_0 : i32
    %c0_i32 = arith.constant 0 : i32
    %c0_i32_1 = arith.constant 0 : i32
    return %arg0, %c0_i32, %1 : i32, i32, i32
  }
  func.func @transform_3(%arg0: i32, %arg1: i32) -> (i32, i32) {
    %c0_i32 = arith.constant 0 : i32
    %c0_i32_0 = arith.constant 0 : i32
    %c0_i32_1 = arith.constant 0 : i32
    return %c0_i32, %c0_i32_0 : i32, i32
  }
  func.func @transform_4(%arg0: i32, %arg1: i32) -> (i32, i32) {
    %c0_i32 = arith.constant 0 : i32
    %c0_i32_0 = arith.constant 0 : i32
    %c0_i32_1 = arith.constant 0 : i32
    return %c0_i32, %c0_i32_0 : i32, i32
  }
  func.func @transform_5(%arg0: i32, %arg1: i32) -> (i32, i32) {
    %c0_i32 = arith.constant 0 : i32
    %c0_i32_0 = arith.constant 0 : i32
    %c0_i32_1 = arith.constant 0 : i32
    return %c0_i32, %c0_i32_0 : i32, i32
  }
  func.func @transform_6(%arg0: i32, %arg1: i32) -> (i32, i32) {
    %c0_i32 = arith.constant 0 : i32
    %c0_i32_0 = arith.constant 0 : i32
    %c0_i32_1 = arith.constant 0 : i32
    return %c0_i32, %c0_i32_0 : i32, i32
  }
  func.func @transform_7(%arg0: i32, %arg1: i32) -> (i32, i32, i32) {
    %c0_i32 = arith.constant 0 : i32
    %c0_i32_0 = arith.constant 0 : i32
    return %arg0, %c0_i32, %arg1 : i32, i32, i32
  }
}

</mosaic_0001>

<bundles_post_ra>
// kernel: tpu_custom_call.1
= control target key start
LH: loop header
LB: loop body
LE: loop exit
PB: predicated region body
PF: predicated region fallthrough
CT: control target
= control target key end

     0   :  { %6 = vsyncpa [#allocation3], 0  ;;  %s137_s0 = inlined_call_operand.hbm [shape: f32[8,256], index: 0, kind: input, shape index: {}]   ;;  %s138_s1 = inlined_call_operand.hbm [shape: f32[8,256], index: 1, kind: output, shape index: {}]  }
   0x1   :  { %7 = vsyncpa [#allocation4], 0  ;;  %s100_s6 = smov [#allocation2]   ;;  %s52_s10 = scalar_lea.hbm %s137_s0, 256 }
   0x2   :  { %s14_s7 = sshll.u32 %s100_s6, 4  ;;  %p53_p0 = scmp.ne.s32.totalorder %s137_s0, %s52_s10  ;;  %s15_s7 = int_to_ptr.vmem [resolvable:$true] %s14_s7 }
   0x3   :  { %p56_p1 = scmp.lt.u32.totalorder %s52_s10, %s137_s0 }
   0x5   :  { %p58_p2 = pnand %p56_p1, %p53_p0 }
   0x7   :  { %61 = shalt.err (!%p58_p2)
}
   0x8   :  { %s62_s15 = scalar_lea.vmem %s15_s7, 256  ;;  %p67_p4 = scmp.lt.s32.totalorder %s15_s7, %s15_s7 }
   0x9   :  { %p63_p3 = scmp.ne.s32.totalorder %s15_s7, %s62_s15  ;;  %p68_p5 = scmp.lt.s32.totalorder %s62_s15, %s62_s15 }
   0xb   :  { %p69_p6 = por %p68_p5, %p67_p4 }
   0xd   :  { %p70_p7 = pnand %p69_p6, %p63_p3 }
   0xf   :  { %73 = shalt.err (!%p70_p7)
}
  0x10   :  { %17 = dma.hbm_to_vmem [thread:$0]  %s137_s0, 256, %s15_s7, [#allocation3]  }
  0x11   :  { %96 = dma.done.wait [#allocation3], 256  }
  0x12   :  { %97 = vsyncadd [#allocation3], 4294967040  ;;  %v21_v0 = vld [vmem:[#allocation2] sm:$0xff]  ;;  %s101_s18 = smov 3   ;;  %v22_v1 = vld [vmem:[#allocation2 + $0x8] sm:$0xff]  ;;  %v27_v2 = vlaneseq  ;;  %s102_s19 = smov [#allocation5]  }
  0x13   :  { %23 = vrot.lane.b32.xlu0 %v21_v0, %s101_s18  ;;  %s40_s20 = sshll.u32 %s102_s19, 4  ;;  %s41_s20 = int_to_ptr.vmem [resolvable:$true] %s40_s20 }
  0x14   :  { %v28_v3 = vand.u32 127, %v27_v2  ;;  %s74_s0 = scalar_lea.vmem %s41_s20, 256  ;;  %p79_p9 = scmp.lt.s32.totalorder %s41_s20, %s41_s20 }
  0x15   :  { %p75_p8 = scmp.ne.s32.totalorder %s41_s20, %s74_s0  ;;  %p80_p10 = scmp.lt.s32.totalorder %s74_s0, %s74_s0 }
  0x16   :  { %vm29_vm0 = vcmp.lt.s32.totalorder %v28_v3, 3 }
  0x17   :  { %25 = vrot.lane.b32.xlu0 %v22_v1, %s101_s18  ;;  %p81_p11 = por %p80_p10, %p79_p9 }
  0x19   :  { %p82_p12 = pnand %p81_p11, %p75_p8 }
  0x85   :  { %v24_v4 = vpop.permute.xlu0 %23 }
  0x89   :  { %v26_v5 = vpop.permute.xlu0 %25 }
  0x8a   :  { %v30_v6 = vsel %vm29_vm0, %v24_v4, %v26_v5  ;;  %v31_v7 = vsel %vm29_vm0, %v26_v5, %v24_v4 }
  0x8b   :  { %32 = vst [vmem:[#allocation5] sm:$0xff] %v30_v6  ;;  %33 = vst [vmem:[#allocation5 + $0x8] sm:$0xff] %v31_v7 }
  0x8c   :  { %85 = shalt.err (!%p82_p12)
}
  0x8d   :  { %s86_s23 = scalar_lea.hbm %s138_s1, 256 }
  0x8e   :  { %p87_p13 = scmp.ne.s32.totalorder %s138_s1, %s86_s23  ;;  %p90_p0 = scmp.lt.u32.totalorder %s86_s23, %s138_s1 }
  0x90   :  { %p92_p1 = pnand %p90_p0, %p87_p13 }
  0x92   :  { %95 = shalt.err (!%p92_p1)
}
  0x93   :  { %43 = dma.vmem_to_hbm [thread:$0]  %s41_s20, 256, %s138_s1, [#allocation4]  }
  0x94   :  { %98 = dma.done.wait [#allocation4], 256  }
  0x95   :  { %99 = vsyncadd [#allocation4], 4294967040 }
  0x96   :  { %47 = vsyncpa [#allocation3], 1 }
  0x97   :  { %48 = vsyncpa [#allocation4], 1 }

// kernel: tpu_custom_call.1
= control target key start
LH: loop header
LB: loop body
LE: loop exit
PB: predicated region body
PF: predicated region fallthrough
CT: control target
= control target key end

     0   :  { %s1501_s0 = inlined_call_operand.hbm [shape: f32[3], index: 0, kind: input, shape index: {}]   ;;  %s1502_s1 = inlined_call_operand.vmem [shape: f32[2,1,640], index: 1, kind: input, shape index: {}]   ;;  %s1503_s2 = inlined_call_operand.vmem [shape: f32[2,1,640], index: 2, kind: input, shape index: {}]   ;;  %s1504_s3 = inlined_call_operand.vmem [shape: f32[16,3], index: 3, kind: input, shape index: {}]   ;;  %s1505_s4 = inlined_call_operand.vmem [shape: f32[16,4], index: 4, kind: input, shape index: {}]   ;;  %s1506_s5 = inlined_call_operand.vmem [shape: f32[32,48], index: 5, kind: input, shape index: {}]   ;;  %s1507_s6 = inlined_call_operand.vmem [shape: f32[2,48], index: 6, kind: input, shape index: {}]   ;;  %s1508_s7 = inlined_call_operand.hbm [shape: f32[2,1,386], index: 7, kind: output, shape index: {}]  }
   0x1   :  { %1511 = sst [smem:[#allocation10_spill]] %s1501_s0 }
   0x2   :  { %12 = vsyncpa [#allocation4], 0 }
   0x3   :  { %13 = vsyncpa [#allocation3], 0 }
   0x4   :  { %15 = vsyncpa [#allocation3 + $0x1], 0  ;;  %s1261_s24 = smov 0   ;;  %s1263_s25 = smov 0  }
   0x5   :  { %s1265_s26 = smov 0   ;;  %s1267_s27 = smov 0  }
   0x6   :  { %s1269_s28 = smov 0   ;;  %s1271_s29 = smov 0  }
   0x7   :  { %s1273_s30 = smov 0   ;;  %s1275_s8 = smov 0  }
   0x8 LB: > { %s913_s9 = sadd.s32 4294967295, %s1208_s8   ;;  %s914_s10 = sadd.s32 4294967294, %s1208_s8   ;;  %s1208_s8 = sphi %s1275_s8, %s21_s8   ;;  %s1204_s30 = sphi %s1273_s30, %s1527_s30   ;;  %s1200_s29 = sphi %s1271_s29, %s1526_s29   ;;  %s1196_s28 = sphi %s1269_s28, %s1525_s28   ;;  %s1192_s27 = sphi %s1267_s27, %s1524_s27   ;;  %s1188_s26 = sphi %s1265_s26, %s1523_s26   ;;  %s1184_s25 = sphi %s1263_s25, %s1522_s25   ;;  %s1180_s24 = sphi %s1261_s24, %s1521_s24  }
   0x9   : > { %s30_s11 = sadd.s32 1, %s1200_s29  ;;  %s33_s12 = sadd.s32 1, %s1204_s30 }
   0xa   : > { %p31_p0 = scmp.ge.s32.totalorder %s30_s11, 4  ;;  %s205_s13 = sadd.s32 1, %s1188_s26 }
   0xb   : > { %p215_p1 = scmp.ne.s32.totalorder %s1188_s26, %s1184_s25  ;;  %p216_p2 = scmp.eq.s32.totalorder %s913_s9, 7 }
   0xc   : > { %s1529_s11 = smov (%p31_p0, %s30_s11), 0  ;;  %s1531_s12 = smov (!%p31_p0, %s33_s12), %s1204_s30 }
   0xd   : > { %1512 = sst [smem:[#allocation8_spill]] %s1529_s11  ;;  %s201_s14 = ssub.s32 %s1200_s29, %s1529_s11 }
   0xe   : > { %p1313_p3 = por %p216_p2, %p215_p1  ;;  %p35_p4 = scmp.ge.s32.totalorder %s1531_s12, 2 }
   0xf   : > { %p221_p5 = scmp.ne.s32.totalorder %s1184_s25, %s1180_s24  ;;  %p222_p6 = scmp.eq.s32.totalorder %s914_s10, 7 }
  0x10   : > { %p915_p7 = scmp.ge.s32.totalorder %s1208_s8, 1  ;;  %s1533_s12 = smov (%p35_p4, %s1531_s12), 0 }
  0x11   : > { %1514 = sst [smem:[#allocation9_spill]] %s1533_s12  ;;  %p1322_p8 = por %p222_p6, %p221_p5 }
  0x12   : > { %p229_p9 = scmp.lt.s32.totalorder %s1208_s8, 9  ;;  %s200_s17 = ssub.s32 %s1204_s30, %s1533_s12 }
  0x13   : > { %s202_s18 = sor.u32 %s201_s14, %s200_s17  ;;  %p1333_p12 = scmp.eq.s32.totalorder %s913_s9, 0 }
  0x14   : > { %p1329_p10 = pnand %p915_p7, %p229_p9  ;;  %p203_p11 = scmp.eq.s32.totalorder %s202_s18, 0 }
  0x15   : > { %s1518_s0 = sld [smem:[#allocation10_spill]] }
  0x16   : > { %p962_p13 = pneg %p1329_p10 }
  0x17   : > { %s1340_s21 = scalar_select %p203_p11, %s1188_s26, %s205_s13  }
  0x18   : > { %p963_p0 = pnand %p1333_p12, %p962_p13 }
  0x1a   : > { %p1099_p2 = pneg %p963_p0 }
  0x1b   : > { %s1097_s10 = scalar_lea.hbm %s1518_s0, 16 }
  0x1c   : > { %p1098_p1 = scmp.ne.s32.totalorder %s1518_s0, %s1097_s10  ;;  %p1104_p6 = scmp.lt.u32.totalorder %s1097_s10, %s1518_s0 }
  0x1e   : > { %p1100_p4 = pnand %p1099_p2, %p1098_p1 }
  0x20   : > { %p1101_p5 = pneg %p1100_p4 }
  0x22   : > { %p1106_p7 = pnand %p1104_p6, %p1101_p5 }
  0x24   : > { %1109 = shalt.err (!%p1106_p7)
}
  0x25   : > { %s1210_s13 = smov [#allocation2]   ;;  %287 = sbr.rel (%p1329_p10) target bundleno = 931 (0x3a3), region = 48 }
  0x26   : > { %965 = dma.hbm_to_smem (!%p963_p0), %s1518_s0, 16, %s1210_s13, [#allocation4]  }
  0x2c   : > { %1171 = dma.done.wait (%p1333_p12), [#allocation4], 16  }
  0x2d   : > { %1173 = vsyncadd (%p1333_p12), [#allocation4], 4294967280 }
  0x2e   : > { %293 = sfence }
  0x2f   : > { %v350_v0 = vld [vmem:[%s1505_s4] sm:$0xff]  ;;  %p329_p9 = scmp.lt.s32.totalorder %s1196_s28, 1  ;;  %v1211_v1 = vmov 2   ;;  %v1212_v2 = vmov 1   ;;  %s336_s11 = sadd.s32 1, %s1192_s27  ;;  %v351_v3 = vld [vmem:[%s1505_s4 + $0x8] sm:$0xff]  ;;  %v362_v12 = vlaneseq }
  0x30   : > { %1048 = vset.pattern.permute.xlu0 %v1211_v1  ;;  %1047 = vset.pattern.permute.xlu1 %v1212_v2  ;;  %p339_p10 = scmp.lt.s32.totalorder %s336_s11, 4  ;;  %p331_p11 = scmp.lt.s32.totalorder %s1192_s27, 4  ;;  %v1213_v4 = vmov 0   ;;  %v1386_v7 = vld [vmem:[%s1504_s3 + $0x8] sm:$0xff]  ;;  %v1391_v8 = vld [vmem:[%s1504_s3] sm:$0xff]  ;;  %v1216_v9 = vmov 3  }
  0x31   : > { %425 = vperm.xlu0 %1048, %v350_v0   ;;  %391 = vperm.xlu1 %1047, %v350_v0   ;;  %s330_s12 = scalar_select %p329_p9, %s1196_s28, 1  ;;  %v363_v14 = vshrl.u32 %v362_v12, 7  ;;  %vm384_vm0 = vcmask 1039360   ;;  %vm418_vm1 = vcmask 1031168   ;;  %vm522_vm6 = vcmask 1014784  }
  0x32   : > { %s1535_s11 = smov (!%p339_p10, %s336_s11), 4  ;;  %vm537_vm7 = vcmask 392192   ;;  %s1219_s0 = smov 120   ;;  %vm700_vm12 = vcmask 982016  }
  0x33   : > { %s955_s10 = smul.u32 5, %s330_s12  ;;  %s1214_s12 = smov 127   ;;  %v364_v16 = vsub.s32 0, %v363_v14 }
  0x34   : > { %s332_s14 = scalar_select %p331_p11, %s1192_s27, 4 }
  0x35   : > { %1049 = vset.pattern.permute.xlu0 %v1213_v4  ;;  %395 = vperm.xlu1 %1047, %v351_v3   ;;  %s342_s17 = sadd.s32 %s955_s10, %s1535_s11  ;;  %s1215_s11 = smov 126  }
  0x36   : > { %354 = vperm.xlu0 %1049, %v350_v0   ;;  %s334_s9 = sadd.s32 %s955_s10, %s332_s14  ;;  %s343_s22 = scalar_lea.vmem %s1503_s2, %s342_s17 }
  0x37   : > { %s335_s19 = scalar_lea.vmem %s1502_s1, %s334_s9  ;;  %v346_v5 = vld [vmem:[%s343_s22] sm:$0x1]  ;;  %s349_s17 = sld [smem:[#allocation2]] }
  0x38   : > { %v345_v6 = vld [vmem:[%s335_s19] sm:$0x1]  ;;  %v369_v20 = vrot.slane %v346_v5, %v364_v16  ;;  %s1218_s9 = smov 124   ;;  %s920_s10 = sld [smem:[#allocation2 + $0x1]] }
  0x39   : > { %1050 = vset.pattern.permute.xlu1 %v1211_v1  ;;  %v365_v19 = vrot.slane %v345_v6, %v364_v16  ;;  %s925_s13 = sld [smem:[#allocation2 + $0x2]]  ;;  %s327_s22 = sand.u32 1, %s1184_s25  }
  0x3a   : > { %359 = vperm.xlu0 %1049, %v351_v3   ;;  %429 = vperm.xlu1 %1050, %v351_v3   ;;  %s927_s23 = sshll.u32 %s1196_s28, 2 }
  0x3b   : > { %s811_s19 = sadd.s32 %s1192_s27, %s927_s23  ;;  %s801_s27 = scalar_lea.sflag [#allocation3], %s327_s22 }
  0x3d   : > { %v478_v54 = vstv %s349_s17  ;;  %s1220_s17 = smov [#allocation5]  }
  0x3e   : > { %382 = vrot.lane.b32.xlu0 %v346_v5, %s1214_s12  ;;  %380 = vrot.lane.b32.xlu1 %v345_v6, %s1214_s12  ;;  %s928_s12 = sshll.u32 %s811_s19, 4 }
  0x3f   : > { %1051 = vset.pattern.permute.xlu1 %v1213_v4  ;;  %s1448_s14 = scalar_lea.hbm %s1508_s7, %s928_s12 }
  0x42   : > { %416 = vrot.lane.b32.xlu0 %v346_v5, %s1215_s11  ;;  %414 = vrot.lane.b32.xlu1 %v345_v6, %s1215_s11 }
  0x46   : > { %467 = vperm.xlu0 %1049, %v1386_v7   ;;  %462 = vperm.xlu1 %1051, %v1391_v8  }
  0x4a   : > { %1052 = vset.pattern.permute.xlu1 %v1216_v9  ;;  %1073 = vset.pattern.permute.xlu0 %v1212_v2 }
  0x4b   : > { %449 = vperm.xlu1 %1052, %v350_v0  }
  0x4f   : > { %453 = vperm.xlu1 %1052, %v351_v3  }
  0x53   : > { %1074 = vset.pattern.permute.xlu1 %v1212_v2 }
  0xb0   : > { %v392_v10 = vpop.permute.xlu1 %391  ;;  %v426_v11 = vpop.permute.xlu0 %425 }
  0xb4   : > { %v396_v13 = vpop.permute.xlu1 %395 }
  0xb5   : > { %v355_v15 = vpop.permute.xlu0 %354 }
  0xb6   : > { %v370_v27 = vmul.f32 %v365_v19, %v355_v15  ;;  %v371_v28 = vmul.f32 %v369_v20, %v355_v15 }
  0xb9   : > { %v360_v17 = vpop.permute.xlu0 %359  ;;  %v430_v18 = vpop.permute.xlu1 %429 }
  0xba   : > { %v372_v35 = vmul.f32 %v365_v19, %v360_v17  ;;  %v373_v36 = vmul.f32 %v369_v20, %v360_v17 }
  0xbd   : > { %v383_v21 = vpop.permute.xlu0 %382  ;;  %v381_v22 = vpop.permute.xlu1 %380 }
  0xbe   : > { %v385_v23 = vsel %vm384_vm0, %v381_v22, %v383_v21  ;;  %v389_v24 = vsel %vm384_vm0, %v383_v21, %v381_v22  ;;  %v1217_v21 = vmov 0.0  }
  0xbf   : > { %v401_v25 = vrot.slane %v385_v23, %v364_v16  ;;  %v405_v26 = vrot.slane %v389_v24, %v364_v16  ;;  %614 = vmatprep.mubr.f32.mxu0 %v1217_v21  ;;  %779 = vmatprep.mubr.f32.mxu1 %v1217_v21 }
  0xc1   : > { %v406_v29 = vmul.f32 %v401_v25, %v392_v10  ;;  %v407_v30 = vmul.f32 %v405_v26, %v392_v10  ;;  %v408_v31 = vmul.f32 %v401_v25, %v396_v13  ;;  %v409_v32 = vmul.f32 %v405_v26, %v396_v13  ;;  %v417_v33 = vpop.permute.xlu0 %416  ;;  %v415_v34 = vpop.permute.xlu1 %414 }
  0xc2   : > { %v419_v37 = vsel %vm418_vm1, %v415_v34, %v417_v33  ;;  %v423_v38 = vsel %vm418_vm1, %v417_v33, %v415_v34 }
  0xc3   : > { %v435_v39 = vrot.slane %v419_v37, %v364_v16  ;;  %v439_v40 = vrot.slane %v423_v38, %v364_v16  ;;  %v412_v41 = vadd.f32 %v408_v31, %v372_v35  ;;  %v413_v42 = vadd.f32 %v409_v32, %v373_v36 }
  0xc4   : > { %v411_v43 = vadd.f32 %v407_v30, %v371_v28  ;;  %v410_v44 = vadd.f32 %v406_v29, %v370_v27 }
  0xc5   : > { %v442_v45 = vmul.f32 %v435_v39, %v430_v18  ;;  %v443_v46 = vmul.f32 %v439_v40, %v430_v18  ;;  %v440_v47 = vmul.f32 %v435_v39, %v426_v11  ;;  %v441_v48 = vmul.f32 %v439_v40, %v426_v11  ;;  %v463_v49 = vpop.permute.xlu1 %462  ;;  %v468_v55 = vpop.permute.xlu0 %467 }
  0xc7   : > { %v446_v50 = vadd.f32 %v442_v45, %v412_v41  ;;  %v447_v51 = vadd.f32 %v443_v46, %v413_v42  ;;  %v445_v52 = vadd.f32 %v441_v48, %v411_v43  ;;  %v444_v53 = vadd.f32 %v440_v47, %v410_v44  ;;  %v533_v43 = vld [vmem:[%s1506_s5] sm:$0xff]  ;;  %v534_v44 = vld [vmem:[%s1506_s5 + $0x8] sm:$0xff]  ;;  %v535_v45 = vld [vmem:[%s1506_s5 + $0x10] sm:$0xff] }
  0xc8   : > { %v536_v46 = vld [vmem:[%s1506_s5 + $0x18] sm:$0xff] }
  0xc9   : > { %v472_v56 = vadd.f32 %v468_v55, %v446_v50  ;;  %v473_v57 = vadd.f32 %v468_v55, %v447_v51  ;;  %v470_v58 = vadd.f32 %v463_v49, %v444_v53  ;;  %v471_v59 = vadd.f32 %v463_v49, %v445_v52 }
  0xca   : > { %v450_v60 = vpop.permute.xlu1 %449  ;;  %v655_v50 = vstv %s920_s10 }
  0xcb   : > { %v481_v61 = vmul.f32 %v478_v54, %v472_v56  ;;  %v482_v62 = vmul.f32 %v478_v54, %v473_v57  ;;  %vm474_vm2 = vcmp.gt.f32.partialorder %v470_v58, 0.0  ;;  %vm475_vm3 = vcmp.gt.f32.partialorder %v471_v59, 0.0 }
  0xcc   : > { %v479_v63 = vmul.f32 %v478_v54, %v470_v58  ;;  %v480_v0 = vmul.f32 %v478_v54, %v471_v59  ;;  %vm476_vm4 = vcmp.gt.f32.partialorder %v472_v56, 0.0  ;;  %vm477_vm5 = vcmp.gt.f32.partialorder %v473_v57, 0.0 }
  0xcd   : > { %v456_v2 = vmul.f32 %v450_v60, %v435_v39  ;;  %v457_v3 = vmul.f32 %v450_v60, %v439_v40  ;;  %v486_v13 = vsel %vm477_vm5, %v473_v57, %v482_v62  ;;  %v485_v14 = vsel %vm476_vm4, %v472_v56, %v481_v61 }
  0xce   : > { %v484_v4 = vsel %vm475_vm3, %v471_v59, %v480_v0  ;;  %v483_v5 = vsel %vm474_vm2, %v470_v58, %v479_v63  ;;  %v454_v6 = vpop.permute.xlu1 %453 }
  0xcf   : > { %v487_v9 = vadd.f32 %v483_v5, %v456_v2  ;;  %v488_v10 = vadd.f32 %v484_v4, %v457_v3  ;;  %v458_v11 = vmul.f32 %v454_v6, %v435_v39  ;;  %v459_v12 = vmul.f32 %v454_v6, %v439_v40 }
  0xd1   : > { %v489_v15 = vadd.f32 %v485_v14, %v458_v11  ;;  %v490_v16 = vadd.f32 %v486_v13, %v459_v12  ;;  %v1053_v17 = vpack.i.bf16 %v488_v10, %v487_v9 }
  0xd3   : > { %1054 = vrot.lane.b32.xlu0 %v1053_v17, %s1215_s11  ;;  %v931_v18 = vpack.c.bf16 %v490_v16, %v488_v10  ;;  %v1058_v19 = vpack.i.bf16 %v490_v16, %v489_v15  ;;  %v933_v20 = vpack.c.bf16 %v489_v15, %v487_v9 }
  0xd5   : > { %932 = vmatprep.subr.bf16.mxu0 %v931_v18  ;;  %1059 = vrot.lane.b32.xlu1 %v1058_v19, %s1215_s11  ;;  %s328_s11 = scalar_lea.vmem [#allocation5], %s327_s22 }
  0xd6   : > { %934 = vmatpush1.bf16.msra.mxu0 %v933_v20  ;;  %s815_s20 = sshll.u32 %s328_s11, 4  ;;  %s1450_s20 = int_to_ptr.vmem [resolvable:$true] %s815_s20 }
  0xd7   : > { %1064 = vrot.lane.b32.xlu0 %v1053_v17, %s1218_s9  ;;  %v668_v17 = vld [vmem:[%s1504_s3] sm:$0x1]  ;;  %s1110_s28 = scalar_lea.vmem %s1450_s20, 16 }
  0xd8   : > { %p1111_p12 = scmp.ne.s32.totalorder %s1450_s20, %s1110_s28 }
  0xd9   : > { %1069 = vrot.lane.b32.xlu1 %v1058_v19, %s1218_s9 }
  0xda   : > { %p1112_p13 = pnand %p1111_p12, %p1313_p3 }
  0xdb   : > { %640 = vperm.xlu0 %1073, %v1391_v8  }
  0xdc   : > { %p1113_p0 = pneg %p1112_p13 }
  0xdd   : > { %644 = vperm.xlu1 %1074, %v1386_v7  }
  0xdf   : > { %1096 = vset.pattern.permute.xlu0 %v1211_v1 }
  0xe1   : > { %1095 = vset.pattern.permute.xlu1 %v1211_v1 }
 0x145   : > { %v1055_v22 = vpop.permute.xlu0 %1054 }
 0x146   : > { %v1057_v23 = vunpack.i.h.bf16 %v1055_v22  ;;  %v1056_v24 = vunpack.i.l.bf16 %v1055_v22 }
 0x147   : > { %v1060_v25 = vpop.permute.xlu1 %1059 }
 0x148   : > { %v1062_v26 = vunpack.i.h.bf16 %v1060_v25  ;;  %v1061_v27 = vunpack.i.l.bf16 %v1060_v25  ;;  %v512_v29 = vsel %vm418_vm1, %v1057_v23, %v1056_v24  ;;  %v504_v30 = vsel %vm418_vm1, %v1056_v24, %v1057_v23 }
 0x149   : > { %v1065_v28 = vpop.permute.xlu0 %1064 }
 0x14a   : > { %v1067_v31 = vunpack.i.h.bf16 %v1065_v28  ;;  %v1066_v32 = vunpack.i.l.bf16 %v1065_v28  ;;  %v513_v8 = vsel %vm418_vm1, %v1062_v26, %v1061_v27  ;;  %v505_v7 = vsel %vm418_vm1, %v1061_v27, %v1062_v26 }
 0x14b   : > { %v1070_v33 = vpop.permute.xlu1 %1069  ;;  %v935_v34 = vpack.c.bf16 %v513_v8, %v512_v29  ;;  %v937_v1 = vpack.c.bf16 %v505_v7, %v504_v30 }
 0x14c   : > { %v1072_v35 = vunpack.i.h.bf16 %v1070_v33  ;;  %v1071_v36 = vunpack.i.l.bf16 %v1070_v33  ;;  %v531_v37 = vsel %vm522_vm6, %v1067_v31, %v1066_v32  ;;  %v523_v39 = vsel %vm522_vm6, %v1066_v32, %v1067_v31 }
 0x14d   : > { %936 = vmatprep.subr.bf16.mxu0 %v935_v34 }
 0x14e   : > { %938 = vmatpush1.bf16.msra.mxu0 %v937_v1  ;;  %v532_v38 = vsel %vm522_vm6, %v1072_v35, %v1071_v36  ;;  %v524_v40 = vsel %vm522_vm6, %v1071_v36, %v1072_v35 }
 0x14f   : > { %v939_v41 = vpack.c.bf16 %v532_v38, %v531_v37  ;;  %v941_v42 = vpack.c.bf16 %v524_v40, %v523_v39  ;;  %v711_v39 = vld [vmem:[%s1507_s6] sm:$0x3] }
 0x151   : > { %940 = vmatprep.subr.bf16.mxu0 %v939_v41 }
 0x152   : > { %942 = vmatpush1.bf16.msra.mxu0 %v941_v42  ;;  %v792_v42 = vstv %s925_s13 }
 0x155   : > { %921 = vmatmul.mubr.msk.f32.vlgmr.msra.gmra.mrb[0].mxu0 %vm537_vm7, %v533_v43 }
 0x156   : > { %620 = vmatprep.mubr.f32.mxu0 %v1217_v21 }
 0x159   : > { %922 = vmatmul.mubr.msk.f32.gmra.mrb[2].mxu0 %vm537_vm7, %v534_v44 }
 0x15a   : > { %626 = vmatprep.mubr.f32.mxu0 %v1217_v21  ;;  %v641_v47 = vpop.permute.xlu0 %640 }
 0x15c   : > { %v645_v53 = vpop.permute.xlu1 %644 }
 0x15d   : > { %923 = vmatmul.mubr.msk.f32.gmra.mrb[4].mxu0 %vm537_vm7, %v535_v45 }
 0x15e   : > { %632 = vmatprep.mubr.f32.mxu0 %v1217_v21 }
 0x161   : > { %924 = vmatmul.mubr.msk.f32.gmra.mrb[6].mxu0 %vm537_vm7, %v536_v46 }
 0x228   : > { %v616_v48 = vpop.f32.mrb[0].mxu0 }
 0x229   : > { %v647_v49 = vadd.f32 %v641_v47, %v616_v48  ;;  %v618_v51 = vpop.f32.mrb[1].mxu0 }
 0x22a   : > { %v648_v52 = vadd.f32 %v641_v47, %v618_v51 }
 0x22b   : > { %v656_v54 = vmul.f32 %v655_v50, %v647_v49  ;;  %vm651_vm8 = vcmp.gt.f32.partialorder %v647_v49, 0.0 }
 0x22c   : > { %v622_v55 = vpop.f32.mrb[2].mxu0  ;;  %v657_v56 = vmul.f32 %v655_v50, %v648_v52  ;;  %vm652_vm9 = vcmp.gt.f32.partialorder %v648_v52, 0.0 }
 0x22d   : > { %v649_v57 = vadd.f32 %v645_v53, %v622_v55  ;;  %v624_v58 = vpop.f32.mrb[3].mxu0  ;;  %v660_v62 = vsel %vm651_vm8, %v647_v49, %v656_v54 }
 0x22e   : > { %v650_v59 = vadd.f32 %v645_v53, %v624_v58  ;;  %v661_v3 = vsel %vm652_vm9, %v648_v52, %v657_v56 }
 0x22f   : > { %v658_v60 = vmul.f32 %v655_v50, %v649_v57  ;;  %vm653_vm10 = vcmp.gt.f32.partialorder %v649_v57, 0.0 }
 0x230   : > { %v628_v61 = vpop.f32.mrb[4].mxu0  ;;  %v659_v63 = vmul.f32 %v655_v50, %v650_v59  ;;  %vm654_vm11 = vcmp.gt.f32.partialorder %v650_v59, 0.0 }
 0x231   : > { %v664_v0 = vadd.f32 %v660_v62, %v628_v61  ;;  %v630_v2 = vpop.f32.mrb[5].mxu0  ;;  %v662_v6 = vsel %vm653_vm10, %v649_v57, %v658_v60 }
 0x232   : > { %v665_v4 = vadd.f32 %v661_v3, %v630_v2  ;;  %v663_v12 = vsel %vm654_vm11, %v650_v59, %v659_v63 }
 0x234   : > { %v634_v5 = vpop.f32.mrb[6].mxu0  ;;  %v1075_v9 = vpack.i.bf16 %v665_v4, %v664_v0 }
 0x235   : > { %v666_v10 = vadd.f32 %v662_v6, %v634_v5  ;;  %v636_v11 = vpop.f32.mrb[7].mxu0 }
 0x236   : > { %v667_v13 = vadd.f32 %v663_v12, %v636_v11  ;;  %1076 = vrot.lane.b32.xlu1 %v1075_v9, %s1218_s9 }
 0x237   : > { %v945_v14 = vpack.c.bf16 %v666_v10, %v664_v0 }
 0x238   : > { %v1085_v15 = vpack.i.bf16 %v667_v13, %v666_v10  ;;  %v943_v16 = vpack.c.bf16 %v667_v13, %v665_v4 }
 0x23a   : > { %1081 = vrot.lane.b32.xlu1 %v1075_v9, %s1219_s0  ;;  %1086 = vrot.lane.b32.xlu0 %v1085_v15, %s1218_s9  ;;  %s1114_s9 = sshll.u32 %s1220_s17, 4  ;;  %s1115_s9 = int_to_ptr.vmem [resolvable:$false] %s1114_s9 }
 0x23b   : > { %944 = vmatprep.subr.bf16.mxu1 %v943_v16  ;;  %s1116_s18 = scalar_lea.vmem %s1115_s9, 32  ;;  %p1117_p1 = scmp.lt.s32.totalorder %s1450_s20, %s1115_s9 }
 0x23c   : > { %946 = vmatpush1.bf16.msra.mxu1 %v945_v14  ;;  %p1118_p2 = scmp.lt.s32.totalorder %s1116_s18, %s1110_s28 }
 0x23e   : > { %1091 = vrot.lane.b32.xlu0 %v1085_v15, %s1219_s0  ;;  %787 = vperm.xlu1 %1095, %v668_v17   ;;  %p1119_p4 = por %p1118_p2, %p1117_p1 }
 0x240   : > { %p1120_p5 = pnand %p1119_p4, %p1113_p0 }
 0x2a8   : > { %v1077_v18 = vpop.permute.xlu1 %1076 }
 0x2a9   : > { %v1079_v19 = vunpack.i.h.bf16 %v1077_v18  ;;  %v1078_v20 = vunpack.i.l.bf16 %v1077_v18 }
 0x2ab   : > { %v690_v25 = vsel %vm522_vm6, %v1079_v19, %v1078_v20  ;;  %v682_v26 = vsel %vm522_vm6, %v1078_v20, %v1079_v19 }
 0x2ac   : > { %v1082_v21 = vpop.permute.xlu1 %1081  ;;  %v1087_v22 = vpop.permute.xlu0 %1086 }
 0x2ad   : > { %v1089_v23 = vunpack.i.h.bf16 %v1087_v22  ;;  %v1088_v24 = vunpack.i.l.bf16 %v1087_v22  ;;  %v1084_v27 = vunpack.i.h.bf16 %v1082_v21  ;;  %v1083_v28 = vunpack.i.l.bf16 %v1082_v21 }
 0x2af   : > { %v691_v29 = vsel %vm522_vm6, %v1089_v23, %v1088_v24  ;;  %v683_v30 = vsel %vm522_vm6, %v1088_v24, %v1089_v23  ;;  %v709_v34 = vsel %vm700_vm12, %v1084_v27, %v1083_v28  ;;  %v701_v35 = vsel %vm700_vm12, %v1083_v28, %v1084_v27 }
 0x2b0   : > { %v1092_v31 = vpop.permute.xlu0 %1091  ;;  %v947_v32 = vpack.c.bf16 %v691_v29, %v690_v25  ;;  %v949_v8 = vpack.c.bf16 %v683_v30, %v682_v26 }
 0x2b1   : > { %v1094_v7 = vunpack.i.h.bf16 %v1092_v31  ;;  %v1093_v33 = vunpack.i.l.bf16 %v1092_v31 }
 0x2b2   : > { %948 = vmatprep.subr.bf16.mxu1 %v947_v32 }
 0x2b3   : > { %950 = vmatpush1.bf16.msra.mxu1 %v949_v8  ;;  %v710_v1 = vsel %vm700_vm12, %v1094_v7, %v1093_v33  ;;  %v702_v36 = vsel %vm700_vm12, %v1093_v33, %v1094_v7 }
 0x2b4   : > { %v951_v37 = vpack.c.bf16 %v710_v1, %v709_v34  ;;  %v953_v38 = vpack.c.bf16 %v702_v36, %v701_v35 }
 0x2b6   : > { %952 = vmatprep.subr.bf16.mxu1 %v951_v37 }
 0x2b7   : > { %954 = vmatpush1.bf16.msra.mxu1 %v953_v38 }
 0x2ba   : > { %926 = vmatmul.mubr.msk.f32.vlgmr.msra.gmra.mrb[0].mxu1 %vm537_vm7, %v711_v39 }
 0x2bd   : > { %v788_v40 = vpop.permute.xlu1 %787 }
 0x38d   : > { %v781_v41 = vpop.f32.mrb[0].mxu1 }
 0x38e   : > { %v790_v43 = vadd.f32 %v788_v40, %v781_v41  ;;  %v783_v44 = vpop.f32.mrb[1].mxu1  ;;  %v796_v46 = vrot.slane %v781_v41, 1 }
 0x390   : > { %vm791_vm13 = vcmp.gt.f32.partialorder %v790_v43, 0.0  ;;  %v793_v45 = vmul.f32 %v792_v42, %v790_v43 }
 0x392   : > { %v794_v47 = vsel %vm791_vm13, %v790_v43, %v793_v45 }
 0x393   : > { %v798_v48 = vadd.f32 %v796_v46, %v794_v47 }
 0x395   : > { %799 = vst [vmem:[%s328_s11] sm:$0x1] %v798_v48 }
 0x396   : > { %1123 = shalt.err (!%p1120_p5)
}
 0x397   : > { %s1124_s13 = scalar_lea.hbm %s1448_s14, 16  ;;  %s1128_s19 = scalar_lea.hbm %s1508_s7, 128 }
 0x398   : > { %p1125_p6 = scmp.ne.s32.totalorder %s1448_s14, %s1124_s13  ;;  %p1129_p10 = scmp.lt.u32.totalorder %s1448_s14, %s1508_s7 }
 0x399   : > { %p1130_p11 = scmp.lt.u32.totalorder %s1128_s19, %s1124_s13  ;;  %p1132_p13 = scmp.lt.u32.totalorder %s1124_s13, %s1448_s14 }
 0x39a   : > { %p1126_p7 = pnand %p1125_p6, %p1313_p3 }
 0x39b   : > { %p1131_p12 = por %p1130_p11, %p1129_p10 }
 0x39c   : > { %p1127_p9 = pneg %p1126_p7 }
 0x39d   : > { %p1133_p0 = por %p1132_p13, %p1131_p12 }
 0x39f   : > { %p1134_p1 = pnand %p1133_p0, %p1127_p9 }
 0x3a1   : > { %1137 = shalt.err (!%p1134_p1)
}
 0x3a2   : > { %960 = dma.vmem_to_hbm [thread:$0]  (%p1313_p3), %s1450_s20, 16, %s1448_s14, %s801_s27  }
 0x3a3 PF: > { %p972_p2 = scmp.ge.s32.totalorder %s1208_s8, 2  ;;  %s827_s10 = sand.u32 1, %s1180_s24  }
 0x3a4   : > { %s828_s0 = scalar_lea.sflag [#allocation3], %s827_s10 }
 0x3a5   : > { %p967_p4 = pnand %p972_p2, %p1322_p8 }
 0x3a7   : > { %1175 = dma.done.wait (!%p967_p4), %s828_s0, 16  }
 0x3a8   : > { %1177 = vsyncadd (!%p967_p4), %s828_s0, 4294967280  ;;  %s21_s8 = sadd.s32 1, %s1208_s8   ;;  %s1519_s15 = sld [smem:[#allocation8_spill]] }
 0x3a9   : > { %p18_p5 = scmp.ge.s32.totalorder %s21_s8, 10   ;;  %s1520_s20 = sld [smem:[#allocation9_spill]] }
 0x3aa   : > { %s1521_s24 = smov %s1184_s25  ;;  %s1522_s25 = smov %s1188_s26 }
 0x3ab   : > { %s1523_s26 = smov %s1340_s21  ;;  %s1524_s27 = smov %s1200_s29 }
 0x3ac   : > { %s1525_s28 = smov %s1204_s30  ;;  %20 = sbr.rel (!%p18_p5) target bundleno = 8 (0x8), region = 91 }
 0x3ae   : > { %s1526_s29 = smov %s1519_s15 }
 0x3af   : > { %s1527_s30 = smov %s1520_s20 }
 0x3b3   :  { %832 = vsyncpa [#allocation3], 1 }
 0x3b4   :  { %834 = vsyncpa [#allocation3 + $0x1], 1 }
 0x3b5   :  { %835 = vsyncpa [#allocation4], 1 }
 0x3b6   :  { %837 = vsyncpa [#allocation4 + $0x1], 1 }

</bundles_post_ra>
